<compile_context>
chip_gen: v5e
topology: v5e:2x2
jax: 0.10.0
libtpu: 0.0.40
codegen_flags: <defaults>
</compile_context>

<pallas_src>
import functools

import jax
import jax.numpy as jnp
from jax.experimental import pallas as pl
from jax.experimental.pallas import tpu as pltpu


def _round_up(x, m):
    return ((x + m - 1) // m) * m


def _fused_mlp_kernel(*refs, num_layers, use_relu, compute_dtype, approx_sigmoid):
    """refs = (x_ref, w1_ref, b1_ref, ..., wN_ref, bN_ref, o_ref).

    x_ref: (TB, D_in) f32; w_l: (D_l, D_{l+1}) compute_dtype; b_l: (1, D_{l+1})
    f32; o_ref: (TB, D_out) f32.  All intermediates stay in vregs/VMEM — nothing
    is written back to HBM between layers.
    """
    x_ref, o_ref = refs[0], refs[-1]
    wb = refs[1:-1]

    # In-kernel f32 -> compute_dtype cast: rides otherwise-idle VALU slots and
    # avoids a separate wrapper-side HBM pass over x.
    h = x_ref[...].astype(compute_dtype)
    for l in range(num_layers):
        w_ref, b_ref = wb[2 * l], wb[2 * l + 1]
        # MXU matmul with f32 accumulation; bias add in f32 on the VPU.
        y = jnp.dot(h, w_ref[...], preferred_element_type=jnp.float32)
        y = y + b_ref[...]
        if l < num_layers - 1:
            # Hidden activation: ReLU if requested, else Identity
            # (matches nn.ReLU() if activation=='relu' else nn.Identity()).
            if use_relu:
                y = jnp.maximum(y, 0.0)
            h = y.astype(compute_dtype)  # back to compute dtype for the next MXU pass
        else:
            # Classifier head: Sigmoid. exp goes to the EUP; reciprocal also
            # goes to the EUP when approx (exact VPU divide otherwise).
            denom = 1.0 + jnp.exp(-y)
            if approx_sigmoid:
                sig = pl.reciprocal(denom, approx=True)
            else:
                sig = 1.0 / denom
            o_ref[...] = sig.astype(o_ref.dtype)


def prepare_mlp_params(params, compute_dtype=jnp.bfloat16):
    """One-time parameter prep (hoisted out of the forward call).

    params: list of (w, b) with w: (D_in_l, D_out_l) (PyTorch nn.Linear weight
    transposed), b: (D_out_l,) or (1, D_out_l).
    Returns a flat tuple (w1, b1, ..., wN, bN): weights in compute_dtype (MXU
    operand dtype), biases as (1, D) f32 (added onto the f32 accumulator).
    """
    flat = []
    for (w, b) in params:
        flat.append(jnp.asarray(w, dtype=compute_dtype))
        flat.append(jnp.asarray(b, dtype=jnp.float32).reshape(1, -1))
    return tuple(flat)


def mlp_classifier_forward(x, flat_params, activation="relu", *,
                           block_b=2048, compute_dtype=jnp.bfloat16,
                           approx_sigmoid=True):
    """Fused forward: sigmoid(Wn @ ... relu(W1 @ x + b1) ... + bn).

    x: (B, D_in) f32.  flat_params: output of prepare_mlp_params().
    """
    B, Din = x.shape
    assert len(flat_params) % 2 == 0 and len(flat_params) >= 2
    num_layers = len(flat_params) // 2
    weights = flat_params[0::2]
    Dout = int(weights[-1].shape[1])
    use_relu = (activation == "relu")

    kernel = functools.partial(
        _fused_mlp_kernel,
        num_layers=num_layers,
        use_relu=use_relu,
        compute_dtype=compute_dtype,
        approx_sigmoid=approx_sigmoid,
    )

    # Advisory cost hint so XLA schedules the custom call sensibly.
    flops = 2 * B * sum(int(w.shape[0]) * int(w.shape[1]) for w in weights)
    bytes_accessed = (int(x.size) * x.dtype.itemsize
                      + sum(int(a.size) * a.dtype.itemsize for a in flat_params)
                      + B * Dout * 4)
    cost = pl.CostEstimate(flops=flops,
                           transcendentals=B * Dout,
                           bytes_accessed=bytes_accessed)

    out_shape = jax.ShapeDtypeStruct((B, Dout), jnp.float32)
    # Whole-array VMEM-resident operand (no blocking, DMA'd once).
    vmem_spec = pl.BlockSpec(memory_space=pltpu.MemorySpace.VMEM)
    # 32 MiB scoped-VMEM limit keeps the larger blocks portable to v5e (16 MiB
    # default) while staying under v7x's 64 MiB physical VMEM.
    vmem_limit = 32 * 1024 * 1024

    if B <= block_b:
        # Gridless single block: no grid / double-buffer scaffolding; x, all
        # weights and the output are whole-array VMEM operands.  Only x and the
        # final (B, Dout) logits touch HBM.
        return pl.pallas_call(
            kernel,
            out_shape=out_shape,
            in_specs=[vmem_spec] * (1 + len(flat_params)),
            out_specs=vmem_spec,
            compiler_params=pltpu.CompilerParams(vmem_limit_bytes=vmem_limit),
            cost_estimate=cost,
        )(x, *flat_params)

    # Batch-tiled path: tile ONLY the batch axis.  Pick the tile so the grid has
    # at least 4 steps (>= 2 per TensorCore on v7x) so x DMAs pipeline with
    # compute; weights/biases are whole-array VMEM residents (fetched once).
    tb = min(int(block_b), _round_up(pl.cdiv(B, 4), 8))
    tb = max(tb, 8)
    in_specs = [pl.BlockSpec((tb, Din), lambda i: (i, 0))]
    in_specs += [vmem_spec] * len(flat_params)
    return pl.pallas_call(
        kernel,
        out_shape=out_shape,
        grid=(pl.cdiv(B, tb),),
        in_specs=in_specs,
        out_specs=pl.BlockSpec((tb, Dout), lambda i: (i, 0)),
        compiler_params=pltpu.CompilerParams(
            dimension_semantics=("parallel",),   # v7x: shard batch over 2 TCs
            vmem_limit_bytes=vmem_limit),
        cost_estimate=cost,
    )(x, *flat_params)


def init_mlp_params(key, input_dim, hidden_dims, output_dim):
    """Deterministic parameter init (mimics nn.Linear's uniform fan-in init)."""
    dims = [input_dim, *hidden_dims, output_dim]
    params = []
    for di, do in zip(dims[:-1], dims[1:]):
        key, kw, kb = jax.random.split(key, 3)
        bound = 1.0 / jnp.sqrt(di)
        w = jax.random.uniform(kw, (di, do), jnp.float32, -bound, bound)
        b = jax.random.uniform(kb, (1, do), jnp.float32, -bound, bound)
        params.append((w, b))
    return params


def mlp_classifier_ref(x, params, activation="relu", compute_dtype=jnp.bfloat16):
    """Pure-JAX reference with the same operand-dtype / f32-accumulate recipe."""
    h = x.astype(compute_dtype)
    n = len(params)
    for l, (w, b) in enumerate(params):
        y = jnp.dot(h, w.astype(compute_dtype), preferred_element_type=jnp.float32)
        y = y + b.reshape(1, -1).astype(jnp.float32)
        if l < n - 1:
            if activation == "relu":
                y = jnp.maximum(y, 0.0)
            h = y.astype(compute_dtype)
        else:
            return jax.nn.sigmoid(y)


if __name__ == "__main__":
    # Small shapes consistent with the module: input_dim=32, hidden=[64, 32], output_dim=8
    B, input_dim, hidden_dims, output_dim = 8, 32, [64, 32], 8

    key = jax.random.PRNGKey(0)
    key, kx = jax.random.split(key)
    x = jax.random.normal(kx, (B, input_dim), jnp.float32)
    params = init_mlp_params(key, input_dim, hidden_dims, output_dim)

    # One-time (hoisted) parameter prep.
    prepared_bf16 = prepare_mlp_params(params, compute_dtype=jnp.bfloat16)

    # 1) Gridless (single-block) bf16 path at toy batch.
    out = jax.block_until_ready(
        mlp_classifier_forward(x, prepared_bf16, activation="relu"))
    ref = mlp_classifier_ref(x, params, activation="relu")
    assert out.shape == (B, output_dim)
    assert jnp.allclose(out, ref, atol=3e-3), "mismatch vs. reference (small batch)"

    # 2) Batch-tiled ("parallel" grid) path: force it with a small block_b so the
    #    grid gets 4 steps (>= 2 per TensorCore on v7x) while shapes stay small.
    B_big = 256
    key, kx2 = jax.random.split(key)
    x_big = jax.random.normal(kx2, (B_big, input_dim), jnp.float32)
    out_big = jax.block_until_ready(
        mlp_classifier_forward(x_big, prepared_bf16, activation="relu", block_b=64))
    ref_big = mlp_classifier_ref(x_big, params, activation="relu")
    assert out_big.shape == (B_big, output_dim)
    assert jnp.allclose(out_big, ref_big, atol=3e-3), "mismatch vs. reference (tiled batch)"

    # 3) f32 parity-style path (exact sigmoid, f32 matmul operands).  Loose-ish
    #    tolerance only to stay robust across MXU f32-emulation modes.
    prepared_f32 = prepare_mlp_params(params, compute_dtype=jnp.float32)
    out_f32 = jax.block_until_ready(
        mlp_classifier_forward(x, prepared_f32, activation="relu",
                               compute_dtype=jnp.float32, approx_sigmoid=False))
    ref_f32 = mlp_classifier_ref(x, params, activation="relu",
                                 compute_dtype=jnp.float32)
    assert jnp.allclose(out_f32, ref_f32, atol=2e-3), "mismatch vs. reference (f32 path)"

    print("KERNEL_OK")
</pallas_src>

<mosaic_0001>
module attributes {stable_mosaic.version = 11 : i64} {
  func.func @_fused_mlp_kernel(%arg0: memref<8x32xf32, #tpu.memory_space<vmem>>, %arg1: memref<32x64xbf16, #tpu.memory_space<vmem>>, %arg2: memref<1x64xf32, #tpu.memory_space<vmem>>, %arg3: memref<64x32xbf16, #tpu.memory_space<vmem>>, %arg4: memref<1x32xf32, #tpu.memory_space<vmem>>, %arg5: memref<32x8xbf16, #tpu.memory_space<vmem>>, %arg6: memref<1x8xf32, #tpu.memory_space<vmem>>, %arg7: memref<8x8xf32, #tpu.memory_space<vmem>>) attributes {dimension_semantics = [], scalar_prefetch = 0 : i64, scratch_operands = 0 : i64, tpu.core_type = #tpu.core_type<tc>} {
    %c0 = arith.constant 0 : index
    %c0_0 = arith.constant 0 : index
    %0 = vector.load %arg0[%c0, %c0_0] : memref<8x32xf32, #tpu.memory_space<vmem>>, vector<8x32xf32>
    %1 = arith.truncf %0 : vector<8x32xf32> to vector<8x32xbf16>
    %c0_1 = arith.constant 0 : index
    %c0_2 = arith.constant 0 : index
    %2 = vector.load %arg1[%c0_1, %c0_2] : memref<32x64xbf16, #tpu.memory_space<vmem>>, vector<32x64xbf16>
    %cst = arith.constant dense<0.000000e+00> : vector<8x64xf32>
    %3 = tpu.matmul %1, %2, %cst {dimension_numbers = #tpu.dot_dimension_numbers<[1], [0], [0], [1], [0, 0, 1, 1], [], []>} : vector<8x32xbf16>, vector<32x64xbf16>, vector<8x64xf32> -> vector<8x64xf32>
    %c0_3 = arith.constant 0 : index
    %c0_4 = arith.constant 0 : index
    %4 = vector.load %arg2[%c0_3, %c0_4] : memref<1x64xf32, #tpu.memory_space<vmem>>, vector<1x64xf32>
    %5 = vector.broadcast %4 : vector<1x64xf32> to vector<8x64xf32>
    %6 = arith.addf %3, %5 : vector<8x64xf32>
    %cst_5 = arith.constant 0.000000e+00 : f32
    %7 = vector.broadcast %cst_5 : f32 to vector<8x64xf32>
    %8 = arith.maximumf %6, %7 : vector<8x64xf32>
    %9 = arith.truncf %8 : vector<8x64xf32> to vector<8x64xbf16>
    %c0_6 = arith.constant 0 : index
    %c0_7 = arith.constant 0 : index
    %10 = vector.load %arg3[%c0_6, %c0_7] : memref<64x32xbf16, #tpu.memory_space<vmem>>, vector<64x32xbf16>
    %cst_8 = arith.constant dense<0.000000e+00> : vector<8x32xf32>
    %11 = tpu.matmul %9, %10, %cst_8 {dimension_numbers = #tpu.dot_dimension_numbers<[1], [0], [0], [1], [0, 0, 1, 1], [], []>} : vector<8x64xbf16>, vector<64x32xbf16>, vector<8x32xf32> -> vector<8x32xf32>
    %c0_9 = arith.constant 0 : index
    %c0_10 = arith.constant 0 : index
    %12 = vector.load %arg4[%c0_9, %c0_10] : memref<1x32xf32, #tpu.memory_space<vmem>>, vector<1x32xf32>
    %13 = vector.broadcast %12 : vector<1x32xf32> to vector<8x32xf32>
    %14 = arith.addf %11, %13 : vector<8x32xf32>
    %cst_11 = arith.constant 0.000000e+00 : f32
    %15 = vector.broadcast %cst_11 : f32 to vector<8x32xf32>
    %16 = arith.maximumf %14, %15 : vector<8x32xf32>
    %17 = arith.truncf %16 : vector<8x32xf32> to vector<8x32xbf16>
    %c0_12 = arith.constant 0 : index
    %c0_13 = arith.constant 0 : index
    %18 = vector.load %arg5[%c0_12, %c0_13] : memref<32x8xbf16, #tpu.memory_space<vmem>>, vector<32x8xbf16>
    %cst_14 = arith.constant dense<0.000000e+00> : vector<8x8xf32>
    %19 = tpu.matmul %17, %18, %cst_14 {dimension_numbers = #tpu.dot_dimension_numbers<[1], [0], [0], [1], [0, 0, 1, 1], [], []>} : vector<8x32xbf16>, vector<32x8xbf16>, vector<8x8xf32> -> vector<8x8xf32>
    %c0_15 = arith.constant 0 : index
    %c0_16 = arith.constant 0 : index
    %20 = vector.load %arg6[%c0_15, %c0_16] : memref<1x8xf32, #tpu.memory_space<vmem>>, vector<1x8xf32>
    %21 = vector.broadcast %20 : vector<1x8xf32> to vector<8x8xf32>
    %22 = arith.addf %19, %21 : vector<8x8xf32>
    %cst_17 = arith.constant 0.000000e+00 : f32
    %23 = vector.broadcast %cst_17 : f32 to vector<8x8xf32>
    %24 = arith.subf %23, %22 : vector<8x8xf32>
    %25 = math.exp %24 : vector<8x8xf32>
    %cst_18 = arith.constant 1.000000e+00 : f32
    %26 = vector.broadcast %cst_18 : f32 to vector<8x8xf32>
    %27 = arith.addf %26, %25 : vector<8x8xf32>
    %28 = tpu.reciprocal %27 {approx = true} : vector<8x8xf32> -> vector<8x8xf32>
    %c0_19 = arith.constant 0 : index
    %c0_20 = arith.constant 0 : index
    %29 = vector.load %arg7[%c0_19, %c0_20] : memref<8x8xf32, #tpu.memory_space<vmem>>, vector<8x8xf32>
    tpu.vector_store %arg7[%c0_19, %c0_20], %28 {strides = array<i32>} : memref<8x8xf32, #tpu.memory_space<vmem>>, vector<8x8xf32>,
    return
  }
}

</mosaic_0001>

<bundles_post_ra>
// kernel: tpu_custom_call.1
= control target key start
LH: loop header
LB: loop body
LE: loop exit
PB: predicated region body
PF: predicated region fallthrough
CT: control target
= control target key end

     0   :  { %s342_s0 = inlined_call_operand.vmem [shape: f32[8,32], index: 0, kind: input, shape index: {}]   ;;  %s343_s1 = inlined_call_operand.vmem [shape: bf16[32,64], index: 1, kind: input, shape index: {}]   ;;  %s344_s2 = inlined_call_operand.vmem [shape: f32[1,64], index: 2, kind: input, shape index: {}]   ;;  %s345_s3 = inlined_call_operand.vmem [shape: bf16[64,32], index: 3, kind: input, shape index: {}]   ;;  %s346_s4 = inlined_call_operand.vmem [shape: f32[1,32], index: 4, kind: input, shape index: {}]   ;;  %s347_s5 = inlined_call_operand.vmem [shape: bf16[32,8], index: 5, kind: input, shape index: {}]   ;;  %s348_s6 = inlined_call_operand.vmem [shape: f32[1,8], index: 6, kind: input, shape index: {}]   ;;  %s349_s7 = inlined_call_operand.hbm [shape: f32[8,8], index: 7, kind: output, shape index: {}]  }
   0x1   :  { %v219_v0 = vld [vmem:[%s343_s1 + $0x8] sm:$0xff]  ;;  %v218_v1 = vld [vmem:[%s343_s1] sm:$0xff]  ;;  %v223_v2 = vld [vmem:[%s345_s3 + $0x18] sm:$0xff] }
   0x2   :  { %60 = vmatpush.bf16.msra.mxu0 %v219_v0  ;;  %v28_v3 = vld [vmem:[%s342_s0] sm:$0xff]  ;;  %113 = vmatpush.bf16.msra.mxu1 %v223_v2  ;;  %v222_v4 = vld [vmem:[%s345_s3 + $0x10] sm:$0xff] }
   0x3   :  { %12 = vsyncpa [#allocation3], 0  ;;  %v29_v5 = vpack.c.bf16 %v28_v3, %v28_v3  ;;  %vm50_vm0 = vcmask 261120   ;;  %v221_v6 = vld [vmem:[%s345_s3 + $0x8] sm:$0xff]  ;;  %v220_v7 = vld [vmem:[%s345_s3] sm:$0xff]  ;;  %vm105_vm1 = vcmask 523264  }
   0x4   :  { %v227_v8 = vld [vmem:[%s344_s2] ss:$0 sm:$0xff]  ;;  %v225_v14 = vld [vmem:[%s347_s5 + $0x8] sm:$0xff]  ;;  %s174_s23 = sshll.u32 %s349_s7, 4  ;;  %vm165_vm2 = vcmask 64512   ;;  %s175_s23 = int_to_ptr.hbm [resolvable:$true] %s174_s23 }
   0x5   :  { %153 = vmatpush.bf16.msra.mxu2 %v225_v14  ;;  %v224_v15 = vld [vmem:[%s347_s5] sm:$0xff] }
   0x6   :  { %61 = vmatpush.bf16.msra.mxu0 %v218_v1  ;;  %114 = vmatpush.bf16.msra.mxu1 %v222_v4  ;;  %v228_v16 = vld [vmem:[%s346_s4] ss:$0 sm:$0xff]  ;;  %s260_s4 = smov [#allocation2]  }
   0x7   :  { %v229_v22 = vld [vmem:[%s348_s6] ss:$0 sm:$0xff]  ;;  %s172_s5 = sshll.u32 %s260_s4, 4  ;;  %s173_s5 = int_to_ptr.vmem [resolvable:$true] %s172_s5 }
   0x9   :  { %191 = vmatmul.msk.bf16.vlgmr.msra.gmra.mxu0 %vm50_vm0, %v29_v5  ;;  %154 = vmatpush.bf16.msra.mxu2 %v224_v15 }
   0xa   :  { %115 = vmatpush.bf16.msra.mxu1 %v221_v6 }
   0xe   :  { %116 = vmatpush.bf16.msra.mxu1 %v220_v7 }
  0x86   :  { %v63_v9 = vpop.f32.mrf.mxu0 }
  0x87   :  { %v64_v10 = vadd.f32 %v227_v8, %v63_v9 }
  0x89   :  { %v67_v11 = vmax.f32 %v64_v10, 0.0 }
  0x8b   :  { %v68_v12 = vpack.c.bf16 %v67_v11, %v67_v11 }
  0x8d   :  { %208 = vmatmul.msk.bf16.vlgmr.msra.gmra.mxu1 %vm105_vm1, %v68_v12 }
  0x8e   :  { %v65_v13 = vpop.f32.mrf.mxu0 }
 0x10a   :  { %v118_v17 = vpop.f32.mrf.mxu1 }
 0x10b   :  { %v119_v18 = vadd.f32 %v228_v16, %v118_v17 }
 0x10d   :  { %v122_v19 = vmax.f32 %v119_v18, 0.0 }
 0x10f   :  { %v123_v20 = vpack.c.bf16 %v122_v19, %v122_v19 }
 0x111   :  { %217 = vmatmul.msk.bf16.vlgmr.msra.gmra.mxu2 %vm50_vm0, %v123_v20 }
 0x112   :  { %v120_v21 = vpop.f32.mrf.mxu1 }
 0x194   :  { %v156_v23 = vpop.f32.mrf.mxu2 }
 0x195   :  { %v157_v24 = vadd.f32 %v229_v22, %v156_v23 }
 0x197   :  { %v160_v25 = vsub.f32 0.0, %v157_v24 }
 0x199   :  { %v161_v26 = vmul.f32 1.442695, %v160_v25 }
 0x19b   :  { %230 = vpow2.f32 %v161_v26 }
 0x19c   :  { %v158_v27 = vpop.f32.mrf.mxu2 }
 0x1a1   :  { %v231_v28 = vpop.eup %230 }
 0x1a2   :  { %v163_v29 = vadd.f32 1.0, %v231_v28 }
 0x1a4   :  { %232 = vrcp.f32 %v163_v29 }
 0x1aa   :  { %v233_v30 = vpop.eup %232 }
 0x1ab   :  { %166 = vst.msk [vmem:[#allocation2] sm:$0xff] %vm165_vm2, %v233_v30 }
 0x1ac   :  { %177 = dma.vmem_to_hbm [thread:$0]  %s173_s5, 128, %s175_s23, [#allocation3]  }
 0x1ad   :  { %258 = dma.done.wait [#allocation3], 128  }
 0x1ae   :  { %259 = vsyncadd [#allocation3], 4294967168 }
 0x1af   :  { %182 = vsyncpa [#allocation3], 1 }

</bundles_post_ra>
